<compile_context>
chip_gen: v6e
topology: v6e:2x2x1
jax: 0.10.0
libtpu: 0.0.40
codegen_flags: <defaults>
</compile_context>

<pallas_src>
import jax
import jax.numpy as jnp
from jax.experimental import pallas as pl
from jax.experimental.pallas import tpu as pltpu


def _round_up(x, m):
    return (x + m - 1) // m * m


def _cdiv(a, b):
    return -(-a // b)


def _num_tensorcores_per_chip():
    """2 TensorCores on v7x, 1 on v5e/v6e. Conservative fallback = 1."""
    try:
        kind = jax.devices()[0].device_kind.lower()
        return 2 if ("v7" in kind or "7x" in kind) else 1
    except Exception:
        return 1


def _decoder_kernel(x_ref, gc_ref, w1_ref, b1_ref, w2_ref, b2_ref,
                    woh_ref, wogc_ref, bo_ref, out_ref):
    # x_ref: (tm, dim) f32 cls_encoding tile; gc_ref: (tm, g+c) f32.
    x = x_ref[...]

    # FFResidualBlock: bf16 operands on the MXU, f32 accumulation / bias /
    # ReLU / residual (keeps the residual path exact in f32).
    h = jnp.dot(x.astype(jnp.bfloat16), w1_ref[...],
                preferred_element_type=jnp.float32) + b1_ref[...]
    h = jnp.maximum(h, 0.0)
    h = jnp.dot(h.astype(jnp.bfloat16), w2_ref[...],
                preferred_element_type=jnp.float32) + b2_ref[...]
    h = h + x                                   # residual add in f32

    # Output projection, fused: h @ Wo_h + [g|c] @ Wo_gc + bo (bias in f32).
    out = jnp.dot(h.astype(jnp.bfloat16), woh_ref[...],
                  preferred_element_type=jnp.float32)
    out = out + jnp.dot(gc_ref[...].astype(jnp.bfloat16), wogc_ref[...],
                        preferred_element_type=jnp.float32)
    out = out + bo_ref[...]
    out_ref[...] = out.astype(out_ref.dtype)


def prepare_params(params, dim, g_dim, c_dim):
    """One-time weight repack: transpose, cast matmul weights to bf16, keep
    biases in f32, split the output projection into the h-part and the tiny
    [g|c]-part, and zero-pad the output N dimension to a 128 multiple."""
    bf16, f32 = jnp.bfloat16, jnp.float32
    n_out = params["out_b"].shape[0]
    Np = _round_up(n_out, 128)
    gcw = g_dim + c_dim

    w1 = params["ff1_w"].T.astype(bf16)                       # (dim, dim)
    b1 = params["ff1_b"].reshape(1, dim).astype(f32)
    w2 = params["ff2_w"].T.astype(bf16)                       # (dim, dim)
    b2 = params["ff2_b"].reshape(1, dim).astype(f32)

    wo_t = params["out_w"].T.astype(f32)                      # (dim+gcw, n_out)
    woh = jnp.zeros((dim, Np), bf16).at[:, :n_out].set(wo_t[:dim].astype(bf16))
    wogc = jnp.zeros((gcw, Np), bf16).at[:, :n_out].set(wo_t[dim:].astype(bf16))
    bo = jnp.zeros((1, Np), f32).at[0, :n_out].set(params["out_b"].astype(f32))

    return {
        "w1": w1, "b1": b1, "w2": w2, "b2": b2,
        "woh": woh, "wogc": wogc, "bo": bo,
        "dim": dim, "g_dim": g_dim, "c_dim": c_dim,
        "n_out": n_out, "Np": Np,
    }


def drag_transformer_decoder(cls_encoding, global_params, coords, packed,
                             *, block_b=1024):
    dim, g_dim, c_dim = packed["dim"], packed["g_dim"], packed["c_dim"]
    n_out, Np = packed["n_out"], packed["Np"]
    gcw = g_dim + c_dim
    B = cls_encoding.shape[0]

    # Batch tiling: tm = round_up(cdiv(B, ntiles), 8); Bp = ntiles * tm so we
    # never nearly double the padded rows.  On v7x force >= 2 tiles (when B is
    # big enough) so both TensorCores are fed.
    ntiles = max(1, _cdiv(B, block_b))
    if ntiles == 1 and B >= 16 and _num_tensorcores_per_chip() >= 2:
        ntiles = 2
    tm = _round_up(_cdiv(B, ntiles), 8)
    Bp = ntiles * tm

    # Only a tiny wrapper-side concat ((B, g+c) floats) -- the big (Bp, Dp)
    # packed-activation slab of the previous version is gone.
    x = cls_encoding.astype(jnp.float32)
    gc = jnp.concatenate([global_params, coords], axis=-1).astype(jnp.float32)
    if Bp != B:
        x = jnp.pad(x, ((0, Bp - B), (0, 0)))
        gc = jnp.pad(gc, ((0, Bp - B), (0, 0)))

    weights = (packed["w1"], packed["b1"], packed["w2"], packed["b2"],
               packed["woh"], packed["wogc"], packed["bo"])
    weight_bytes = sum(int(w.size) * w.dtype.itemsize for w in weights)
    flops = 2 * B * (2 * dim * dim + (dim + gcw) * n_out)
    bytes_accessed = 4 * (int(x.size) + int(gc.size) + Bp * Np) + weight_bytes

    has_buffered = hasattr(pl, "Buffered")

    def _call(single_buffer_weights):
        if single_buffer_weights:
            def wspec(a):
                return pl.BlockSpec(a.shape, lambda i: (0, 0),
                                    pipeline_mode=pl.Buffered(1))
            wbufs = 1
        else:
            def wspec(a):
                return pl.BlockSpec(a.shape, lambda i: (0, 0))
            wbufs = 2

        # Explicit scoped-VMEM budget: resident weights * buffer_count +
        # double-buffered activation/output tiles + generous headroom.
        act_bytes = 2 * 2 * tm * (dim + gcw + Np) * 4
        vmem_limit = min(weight_bytes * wbufs + act_bytes + (16 << 20), 96 << 20)

        return pl.pallas_call(
            _decoder_kernel,
            out_shape=jax.ShapeDtypeStruct((Bp, Np), jnp.float32),
            grid=(Bp // tm,),
            in_specs=[pl.BlockSpec((tm, dim), lambda i: (i, 0)),
                      pl.BlockSpec((tm, gcw), lambda i: (i, 0))]
                     + [wspec(w) for w in weights],
            out_specs=pl.BlockSpec((tm, Np), lambda i: (i, 0)),
            compiler_params=pltpu.CompilerParams(
                dimension_semantics=("parallel",),
                vmem_limit_bytes=int(vmem_limit)),
            cost_estimate=pl.CostEstimate(
                flops=flops, transcendentals=0, bytes_accessed=bytes_accessed),
        )(x, gc, *weights)

    # Single-buffered resident weights (constant index_map => no re-fetch).
    # Guarded fallback keeps the kernel runnable if Buffered(1) is rejected.
    if has_buffered:
        try:
            out_padded = jax.block_until_ready(_call(True))
        except Exception:
            out_padded = jax.block_until_ready(_call(False))
    else:
        out_padded = jax.block_until_ready(_call(False))

    # Drop batch / lane padding.
    return out_padded[:B, :n_out]


def init_params(key, dim, num_global_parameters, num_output_predictions):
    """Deterministic synthetic parameter init (PyTorch nn.Linear-like)."""
    ks = jax.random.split(key, 6)
    s = 1.0 / jnp.sqrt(dim)
    so = 1.0 / jnp.sqrt(dim + num_global_parameters)
    return {
        "ff1_w": jax.random.uniform(ks[0], (dim, dim), jnp.float32, -s, s),
        "ff1_b": jax.random.uniform(ks[1], (dim,), jnp.float32, -s, s),
        "ff2_w": jax.random.uniform(ks[2], (dim, dim), jnp.float32, -s, s),
        "ff2_b": jax.random.uniform(ks[3], (dim,), jnp.float32, -s, s),
        "out_w": jax.random.uniform(
            ks[4], (num_output_predictions, dim + num_global_parameters),
            jnp.float32, -so, so),
        "out_b": jax.random.uniform(
            ks[5], (num_output_predictions,), jnp.float32, -so, so),
    }


def reference_forward(cls_encoding, global_params, coords, params):
    h = jnp.maximum(cls_encoding @ params["ff1_w"].T + params["ff1_b"], 0.0)
    h = h @ params["ff2_w"].T + params["ff2_b"] + cls_encoding
    cat = jnp.concatenate([h, global_params, coords], axis=-1)
    return cat @ params["out_w"].T + params["out_b"]


if __name__ == "__main__":
    B = 8
    dim = 32
    g_dim = 5            # global_params feature width
    c_dim = 3            # coords feature width
    num_global_parameters = g_dim + c_dim   # must match concat width for the Linear
    num_output_predictions = 4

    key = jax.random.PRNGKey(0)
    k_x, k_g, k_c, k_p = jax.random.split(key, 4)

    cls_encoding = jax.random.normal(k_x, (B, dim), jnp.float32)
    global_params = jax.random.normal(k_g, (B, g_dim), jnp.float32)
    coords = jax.random.normal(k_c, (B, c_dim), jnp.float32)

    params = init_params(k_p, dim, num_global_parameters, num_output_predictions)
    packed = prepare_params(params, dim, g_dim, c_dim)   # one-time weight repack

    out = drag_transformer_decoder(cls_encoding, global_params, coords, packed)
    out = jax.block_until_ready(out)

    ref = reference_forward(cls_encoding, global_params, coords, params)
    assert out.shape == (B, num_output_predictions)
    # bf16 MXU matmuls (f32 accumulation) vs. the pure-f32 reference: expected
    # abs error ~1e-3 at these magnitudes; 2e-2 gives ~10x margin.
    assert jnp.allclose(out, ref, atol=2e-2, rtol=2e-2), float(
        jnp.max(jnp.abs(out - ref)))

    print("KERNEL_OK")
</pallas_src>

<mosaic_0001>
module attributes {stable_mosaic.version = 11 : i64} {
  func.func @_decoder_kernel(%arg0: i32, %arg1: memref<8x32xf32, #tpu.memory_space<vmem>>, %arg2: memref<8x8xf32, #tpu.memory_space<vmem>>, %arg3: memref<32x32xbf16, #tpu.memory_space<vmem>>, %arg4: memref<1x32xf32, #tpu.memory_space<vmem>>, %arg5: memref<32x32xbf16, #tpu.memory_space<vmem>>, %arg6: memref<1x32xf32, #tpu.memory_space<vmem>>, %arg7: memref<32x128xbf16, #tpu.memory_space<vmem>>, %arg8: memref<8x128xbf16, #tpu.memory_space<vmem>>, %arg9: memref<1x128xf32, #tpu.memory_space<vmem>>, %arg10: memref<8x128xf32, #tpu.memory_space<vmem>>) attributes {dimension_semantics = [#tpu.dimension_semantics<parallel>], iteration_bounds = array<i64: 1>, scalar_prefetch = 0 : i64, scratch_operands = 0 : i64, tpu.core_type = #tpu.core_type<tc>, window_params = [{transform_indices = @transform_0, window_bounds = array<i64: 8, 32>}, {transform_indices = @transform_1, window_bounds = array<i64: 8, 8>}, {pipeline_mode = #tpu.pipeline_mode<synchronous>, transform_indices = @transform_2, window_bounds = array<i64: 32, 32>}, {pipeline_mode = #tpu.pipeline_mode<synchronous>, transform_indices = @transform_3, window_bounds = array<i64: 1, 32>}, {pipeline_mode = #tpu.pipeline_mode<synchronous>, transform_indices = @transform_4, window_bounds = array<i64: 32, 32>}, {pipeline_mode = #tpu.pipeline_mode<synchronous>, transform_indices = @transform_5, window_bounds = array<i64: 1, 32>}, {pipeline_mode = #tpu.pipeline_mode<synchronous>, transform_indices = @transform_6, window_bounds = array<i64: 32, 128>}, {pipeline_mode = #tpu.pipeline_mode<synchronous>, transform_indices = @transform_7, window_bounds = array<i64: 8, 128>}, {pipeline_mode = #tpu.pipeline_mode<synchronous>, transform_indices = @transform_8, window_bounds = array<i64: 1, 128>}, {transform_indices = @transform_9, window_bounds = array<i64: 8, 128>}]} {
    %c0 = arith.constant 0 : index
    %c0_0 = arith.constant 0 : index
    %0 = vector.load %arg1[%c0, %c0_0] : memref<8x32xf32, #tpu.memory_space<vmem>>, vector<8x32xf32>
    %1 = arith.truncf %0 : vector<8x32xf32> to vector<8x32xbf16>
    %c0_1 = arith.constant 0 : index
    %c0_2 = arith.constant 0 : index
    %2 = vector.load %arg3[%c0_1, %c0_2] : memref<32x32xbf16, #tpu.memory_space<vmem>>, vector<32x32xbf16>
    %cst = arith.constant dense<0.000000e+00> : vector<8x32xf32>
    %3 = tpu.matmul %1, %2, %cst {dimension_numbers = #tpu.dot_dimension_numbers<[1], [0], [0], [1], [0, 0, 1, 1], [], []>} : vector<8x32xbf16>, vector<32x32xbf16>, vector<8x32xf32> -> vector<8x32xf32>
    %c0_3 = arith.constant 0 : index
    %c0_4 = arith.constant 0 : index
    %4 = vector.load %arg4[%c0_3, %c0_4] : memref<1x32xf32, #tpu.memory_space<vmem>>, vector<1x32xf32>
    %5 = vector.broadcast %4 : vector<1x32xf32> to vector<8x32xf32>
    %6 = arith.addf %3, %5 : vector<8x32xf32>
    %cst_5 = arith.constant 0.000000e+00 : f32
    %7 = vector.broadcast %cst_5 : f32 to vector<8x32xf32>
    %8 = arith.maximumf %6, %7 : vector<8x32xf32>
    %9 = arith.truncf %8 : vector<8x32xf32> to vector<8x32xbf16>
    %c0_6 = arith.constant 0 : index
    %c0_7 = arith.constant 0 : index
    %10 = vector.load %arg5[%c0_6, %c0_7] : memref<32x32xbf16, #tpu.memory_space<vmem>>, vector<32x32xbf16>
    %cst_8 = arith.constant dense<0.000000e+00> : vector<8x32xf32>
    %11 = tpu.matmul %9, %10, %cst_8 {dimension_numbers = #tpu.dot_dimension_numbers<[1], [0], [0], [1], [0, 0, 1, 1], [], []>} : vector<8x32xbf16>, vector<32x32xbf16>, vector<8x32xf32> -> vector<8x32xf32>
    %c0_9 = arith.constant 0 : index
    %c0_10 = arith.constant 0 : index
    %12 = vector.load %arg6[%c0_9, %c0_10] : memref<1x32xf32, #tpu.memory_space<vmem>>, vector<1x32xf32>
    %13 = vector.broadcast %12 : vector<1x32xf32> to vector<8x32xf32>
    %14 = arith.addf %11, %13 : vector<8x32xf32>
    %15 = arith.addf %14, %0 : vector<8x32xf32>
    %16 = arith.truncf %15 : vector<8x32xf32> to vector<8x32xbf16>
    %c0_11 = arith.constant 0 : index
    %c0_12 = arith.constant 0 : index
    %17 = vector.load %arg7[%c0_11, %c0_12] : memref<32x128xbf16, #tpu.memory_space<vmem>>, vector<32x128xbf16>
    %cst_13 = arith.constant dense<0.000000e+00> : vector<8x128xf32>
    %18 = tpu.matmul %16, %17, %cst_13 {dimension_numbers = #tpu.dot_dimension_numbers<[1], [0], [0], [1], [0, 0, 1, 1], [], []>} : vector<8x32xbf16>, vector<32x128xbf16>, vector<8x128xf32> -> vector<8x128xf32>
    %c0_14 = arith.constant 0 : index
    %c0_15 = arith.constant 0 : index
    %19 = vector.load %arg2[%c0_14, %c0_15] : memref<8x8xf32, #tpu.memory_space<vmem>>, vector<8x8xf32>
    %20 = arith.truncf %19 : vector<8x8xf32> to vector<8x8xbf16>
    %c0_16 = arith.constant 0 : index
    %c0_17 = arith.constant 0 : index
    %21 = vector.load %arg8[%c0_16, %c0_17] : memref<8x128xbf16, #tpu.memory_space<vmem>>, vector<8x128xbf16>
    %cst_18 = arith.constant dense<0.000000e+00> : vector<8x128xf32>
    %22 = tpu.matmul %20, %21, %cst_18 {dimension_numbers = #tpu.dot_dimension_numbers<[1], [0], [0], [1], [0, 0, 1, 1], [], []>} : vector<8x8xbf16>, vector<8x128xbf16>, vector<8x128xf32> -> vector<8x128xf32>
    %23 = arith.addf %18, %22 : vector<8x128xf32>
    %c0_19 = arith.constant 0 : index
    %c0_20 = arith.constant 0 : index
    %24 = vector.load %arg9[%c0_19, %c0_20] : memref<1x128xf32, #tpu.memory_space<vmem>>, vector<1x128xf32>
    %25 = vector.broadcast %24 : vector<1x128xf32> to vector<8x128xf32>
    %26 = arith.addf %23, %25 : vector<8x128xf32>
    %c0_21 = arith.constant 0 : index
    %c0_22 = arith.constant 0 : index
    %27 = vector.load %arg10[%c0_21, %c0_22] : memref<8x128xf32, #tpu.memory_space<vmem>>, vector<8x128xf32>
    tpu.vector_store %arg10[%c0_21, %c0_22], %26 {strides = array<i32>} : memref<8x128xf32, #tpu.memory_space<vmem>>, vector<8x128xf32>,
    return
  }
  func.func @transform_0(%arg0: i32) -> (i32, i32) {
    %c0_i32 = arith.constant 0 : i32
    %c0_i32_0 = arith.constant 0 : i32
    return %arg0, %c0_i32 : i32, i32
  }
  func.func @transform_1(%arg0: i32) -> (i32, i32) {
    %c0_i32 = arith.constant 0 : i32
    %c0_i32_0 = arith.constant 0 : i32
    return %arg0, %c0_i32 : i32, i32
  }
  func.func @transform_2(%arg0: i32) -> (i32, i32) {
    %c0_i32 = arith.constant 0 : i32
    %c0_i32_0 = arith.constant 0 : i32
    %c0_i32_1 = arith.constant 0 : i32
    return %c0_i32, %c0_i32_0 : i32, i32
  }
  func.func @transform_3(%arg0: i32) -> (i32, i32) {
    %c0_i32 = arith.constant 0 : i32
    %c0_i32_0 = arith.constant 0 : i32
    %c0_i32_1 = arith.constant 0 : i32
    return %c0_i32, %c0_i32_0 : i32, i32
  }
  func.func @transform_4(%arg0: i32) -> (i32, i32) {
    %c0_i32 = arith.constant 0 : i32
    %c0_i32_0 = arith.constant 0 : i32
    %c0_i32_1 = arith.constant 0 : i32
    return %c0_i32, %c0_i32_0 : i32, i32
  }
  func.func @transform_5(%arg0: i32) -> (i32, i32) {
    %c0_i32 = arith.constant 0 : i32
    %c0_i32_0 = arith.constant 0 : i32
    %c0_i32_1 = arith.constant 0 : i32
    return %c0_i32, %c0_i32_0 : i32, i32
  }
  func.func @transform_6(%arg0: i32) -> (i32, i32) {
    %c0_i32 = arith.constant 0 : i32
    %c0_i32_0 = arith.constant 0 : i32
    %c0_i32_1 = arith.constant 0 : i32
    return %c0_i32, %c0_i32_0 : i32, i32
  }
  func.func @transform_7(%arg0: i32) -> (i32, i32) {
    %c0_i32 = arith.constant 0 : i32
    %c0_i32_0 = arith.constant 0 : i32
    %c0_i32_1 = arith.constant 0 : i32
    return %c0_i32, %c0_i32_0 : i32, i32
  }
  func.func @transform_8(%arg0: i32) -> (i32, i32) {
    %c0_i32 = arith.constant 0 : i32
    %c0_i32_0 = arith.constant 0 : i32
    %c0_i32_1 = arith.constant 0 : i32
    return %c0_i32, %c0_i32_0 : i32, i32
  }
  func.func @transform_9(%arg0: i32) -> (i32, i32) {
    %c0_i32 = arith.constant 0 : i32
    %c0_i32_0 = arith.constant 0 : i32
    return %arg0, %c0_i32 : i32, i32
  }
}

module attributes {stable_mosaic.version = 11 : i64} {
  func.func @_decoder_kernel(%arg0: i32, %arg1: memref<8x32xf32, #tpu.memory_space<vmem>>, %arg2: memref<8x8xf32, #tpu.memory_space<vmem>>, %arg3: memref<32x32xbf16, #tpu.memory_space<vmem>>, %arg4: memref<1x32xf32, #tpu.memory_space<vmem>>, %arg5: memref<32x32xbf16, #tpu.memory_space<vmem>>, %arg6: memref<1x32xf32, #tpu.memory_space<vmem>>, %arg7: memref<32x128xbf16, #tpu.memory_space<vmem>>, %arg8: memref<8x128xbf16, #tpu.memory_space<vmem>>, %arg9: memref<1x128xf32, #tpu.memory_space<vmem>>, %arg10: memref<8x128xf32, #tpu.memory_space<vmem>>) attributes {dimension_semantics = [#tpu.dimension_semantics<parallel>], iteration_bounds = array<i64: 1>, scalar_prefetch = 0 : i64, scratch_operands = 0 : i64, tpu.core_type = #tpu.core_type<tc>, window_params = [{transform_indices = @transform_0, window_bounds = array<i64: 8, 32>}, {transform_indices = @transform_1, window_bounds = array<i64: 8, 8>}, {pipeline_mode = #tpu.pipeline_mode<synchronous>, transform_indices = @transform_2, window_bounds = array<i64: 32, 32>}, {pipeline_mode = #tpu.pipeline_mode<synchronous>, transform_indices = @transform_3, window_bounds = array<i64: 1, 32>}, {pipeline_mode = #tpu.pipeline_mode<synchronous>, transform_indices = @transform_4, window_bounds = array<i64: 32, 32>}, {pipeline_mode = #tpu.pipeline_mode<synchronous>, transform_indices = @transform_5, window_bounds = array<i64: 1, 32>}, {pipeline_mode = #tpu.pipeline_mode<synchronous>, transform_indices = @transform_6, window_bounds = array<i64: 32, 128>}, {pipeline_mode = #tpu.pipeline_mode<synchronous>, transform_indices = @transform_7, window_bounds = array<i64: 8, 128>}, {pipeline_mode = #tpu.pipeline_mode<synchronous>, transform_indices = @transform_8, window_bounds = array<i64: 1, 128>}, {transform_indices = @transform_9, window_bounds = array<i64: 8, 128>}]} {
    %c0 = arith.constant 0 : index
    %c0_0 = arith.constant 0 : index
    %0 = vector.load %arg1[%c0, %c0_0] : memref<8x32xf32, #tpu.memory_space<vmem>>, vector<8x32xf32>
    %1 = arith.truncf %0 : vector<8x32xf32> to vector<8x32xbf16>
    %c0_1 = arith.constant 0 : index
    %c0_2 = arith.constant 0 : index
    %2 = vector.load %arg3[%c0_1, %c0_2] : memref<32x32xbf16, #tpu.memory_space<vmem>>, vector<32x32xbf16>
    %cst = arith.constant dense<0.000000e+00> : vector<8x32xf32>
    %3 = tpu.matmul %1, %2, %cst {dimension_numbers = #tpu.dot_dimension_numbers<[1], [0], [0], [1], [0, 0, 1, 1], [], []>} : vector<8x32xbf16>, vector<32x32xbf16>, vector<8x32xf32> -> vector<8x32xf32>
    %c0_3 = arith.constant 0 : index
    %c0_4 = arith.constant 0 : index
    %4 = vector.load %arg4[%c0_3, %c0_4] : memref<1x32xf32, #tpu.memory_space<vmem>>, vector<1x32xf32>
    %5 = vector.broadcast %4 : vector<1x32xf32> to vector<8x32xf32>
    %6 = arith.addf %3, %5 : vector<8x32xf32>
    %cst_5 = arith.constant 0.000000e+00 : f32
    %7 = vector.broadcast %cst_5 : f32 to vector<8x32xf32>
    %8 = arith.maximumf %6, %7 : vector<8x32xf32>
    %9 = arith.truncf %8 : vector<8x32xf32> to vector<8x32xbf16>
    %c0_6 = arith.constant 0 : index
    %c0_7 = arith.constant 0 : index
    %10 = vector.load %arg5[%c0_6, %c0_7] : memref<32x32xbf16, #tpu.memory_space<vmem>>, vector<32x32xbf16>
    %cst_8 = arith.constant dense<0.000000e+00> : vector<8x32xf32>
    %11 = tpu.matmul %9, %10, %cst_8 {dimension_numbers = #tpu.dot_dimension_numbers<[1], [0], [0], [1], [0, 0, 1, 1], [], []>} : vector<8x32xbf16>, vector<32x32xbf16>, vector<8x32xf32> -> vector<8x32xf32>
    %c0_9 = arith.constant 0 : index
    %c0_10 = arith.constant 0 : index
    %12 = vector.load %arg6[%c0_9, %c0_10] : memref<1x32xf32, #tpu.memory_space<vmem>>, vector<1x32xf32>
    %13 = vector.broadcast %12 : vector<1x32xf32> to vector<8x32xf32>
    %14 = arith.addf %11, %13 : vector<8x32xf32>
    %15 = arith.addf %14, %0 : vector<8x32xf32>
    %16 = arith.truncf %15 : vector<8x32xf32> to vector<8x32xbf16>
    %c0_11 = arith.constant 0 : index
    %c0_12 = arith.constant 0 : index
    %17 = vector.load %arg7[%c0_11, %c0_12] : memref<32x128xbf16, #tpu.memory_space<vmem>>, vector<32x128xbf16>
    %cst_13 = arith.constant dense<0.000000e+00> : vector<8x128xf32>
    %18 = tpu.matmul %16, %17, %cst_13 {dimension_numbers = #tpu.dot_dimension_numbers<[1], [0], [0], [1], [0, 0, 1, 1], [], []>} : vector<8x32xbf16>, vector<32x128xbf16>, vector<8x128xf32> -> vector<8x128xf32>
    %c0_14 = arith.constant 0 : index
    %c0_15 = arith.constant 0 : index
    %19 = vector.load %arg2[%c0_14, %c0_15] : memref<8x8xf32, #tpu.memory_space<vmem>>, vector<8x8xf32>
    %20 = arith.truncf %19 : vector<8x8xf32> to vector<8x8xbf16>
    %c0_16 = arith.constant 0 : index
    %c0_17 = arith.constant 0 : index
    %21 = vector.load %arg8[%c0_16, %c0_17] : memref<8x128xbf16, #tpu.memory_space<vmem>>, vector<8x128xbf16>
    %cst_18 = arith.constant dense<0.000000e+00> : vector<8x128xf32>
    %22 = tpu.matmul %20, %21, %cst_18 {dimension_numbers = #tpu.dot_dimension_numbers<[1], [0], [0], [1], [0, 0, 1, 1], [], []>} : vector<8x8xbf16>, vector<8x128xbf16>, vector<8x128xf32> -> vector<8x128xf32>
    %23 = arith.addf %18, %22 : vector<8x128xf32>
    %c0_19 = arith.constant 0 : index
    %c0_20 = arith.constant 0 : index
    %24 = vector.load %arg9[%c0_19, %c0_20] : memref<1x128xf32, #tpu.memory_space<vmem>>, vector<1x128xf32>
    %25 = vector.broadcast %24 : vector<1x128xf32> to vector<8x128xf32>
    %26 = arith.addf %23, %25 : vector<8x128xf32>
    %c0_21 = arith.constant 0 : index
    %c0_22 = arith.constant 0 : index
    %27 = vector.load %arg10[%c0_21, %c0_22] : memref<8x128xf32, #tpu.memory_space<vmem>>, vector<8x128xf32>
    tpu.vector_store %arg10[%c0_21, %c0_22], %26 {strides = array<i32>} : memref<8x128xf32, #tpu.memory_space<vmem>>, vector<8x128xf32>,
    return
  }
  func.func @transform_0(%arg0: i32) -> (i32, i32) {
    %c0_i32 = arith.constant 0 : i32
    %c0_i32_0 = arith.constant 0 : i32
    return %arg0, %c0_i32 : i32, i32
  }
  func.func @transform_1(%arg0: i32) -> (i32, i32) {
    %c0_i32 = arith.constant 0 : i32
    %c0_i32_0 = arith.constant 0 : i32
    return %arg0, %c0_i32 : i32, i32
  }
  func.func @transform_2(%arg0: i32) -> (i32, i32) {
    %c0_i32 = arith.constant 0 : i32
    %c0_i32_0 = arith.constant 0 : i32
    %c0_i32_1 = arith.constant 0 : i32
    return %c0_i32, %c0_i32_0 : i32, i32
  }
  func.func @transform_3(%arg0: i32) -> (i32, i32) {
    %c0_i32 = arith.constant 0 : i32
    %c0_i32_0 = arith.constant 0 : i32
    %c0_i32_1 = arith.constant 0 : i32
    return %c0_i32, %c0_i32_0 : i32, i32
  }
  func.func @transform_4(%arg0: i32) -> (i32, i32) {
    %c0_i32 = arith.constant 0 : i32
    %c0_i32_0 = arith.constant 0 : i32
    %c0_i32_1 = arith.constant 0 : i32
    return %c0_i32, %c0_i32_0 : i32, i32
  }
  func.func @transform_5(%arg0: i32) -> (i32, i32) {
    %c0_i32 = arith.constant 0 : i32
    %c0_i32_0 = arith.constant 0 : i32
    %c0_i32_1 = arith.constant 0 : i32
    return %c0_i32, %c0_i32_0 : i32, i32
  }
  func.func @transform_6(%arg0: i32) -> (i32, i32) {
    %c0_i32 = arith.constant 0 : i32
    %c0_i32_0 = arith.constant 0 : i32
    %c0_i32_1 = arith.constant 0 : i32
    return %c0_i32, %c0_i32_0 : i32, i32
  }
  func.func @transform_7(%arg0: i32) -> (i32, i32) {
    %c0_i32 = arith.constant 0 : i32
    %c0_i32_0 = arith.constant 0 : i32
    %c0_i32_1 = arith.constant 0 : i32
    return %c0_i32, %c0_i32_0 : i32, i32
  }
  func.func @transform_8(%arg0: i32) -> (i32, i32) {
    %c0_i32 = arith.constant 0 : i32
    %c0_i32_0 = arith.constant 0 : i32
    %c0_i32_1 = arith.constant 0 : i32
    return %c0_i32, %c0_i32_0 : i32, i32
  }
  func.func @transform_9(%arg0: i32) -> (i32, i32) {
    %c0_i32 = arith.constant 0 : i32
    %c0_i32_0 = arith.constant 0 : i32
    return %arg0, %c0_i32 : i32, i32
  }
}

</mosaic_0001>

<bundles_post_ra>
// kernel: tpu_custom_call.1
= control target key start
LH: loop header
LB: loop body
LE: loop exit
PB: predicated region body
PF: predicated region fallthrough
CT: control target
= control target key end

     0   :  { %14 = vsyncpa [#allocation3], 0  ;;  %s677_s0 = inlined_call_operand.hbm [shape: f32[8,32], index: 0, kind: input, shape index: {}]   ;;  %s678_s1 = inlined_call_operand.hbm [shape: f32[8,8], index: 1, kind: input, shape index: {}]   ;;  %s679_s2 = inlined_call_operand.hbm [shape: bf16[32,32], index: 2, kind: input, shape index: {}]   ;;  %s680_s3 = inlined_call_operand.vmem [shape: f32[1,32], index: 3, kind: input, shape index: {}]   ;;  %s681_s4 = inlined_call_operand.hbm [shape: bf16[32,32], index: 4, kind: input, shape index: {}]   ;;  %s682_s5 = inlined_call_operand.vmem [shape: f32[1,32], index: 5, kind: input, shape index: {}]   ;;  %s683_s6 = inlined_call_operand.hbm [shape: bf16[32,128], index: 6, kind: input, shape index: {}]   ;;  %s684_s7 = inlined_call_operand.vmem [shape: bf16[8,128], index: 7, kind: input, shape index: {}]   ;;  %s685_s8 = inlined_call_operand.vmem [shape: f32[1,128], index: 8, kind: input, shape index: {}]   ;;  %s686_s9 = inlined_call_operand.hbm [shape: f32[8,128], index: 9, kind: output, shape index: {}]  }
   0x1   :  { %15 = vsyncpa [#allocation6], 0 }
   0x2   :  { %16 = vsyncpa [#allocation9], 0 }
   0x3   :  { %17 = vsyncpa [#allocation4], 0  ;;  %s571_s30 = smov [#allocation5]  }
   0x4   :  { %s34_s10 = sshll.u32 %s571_s30, 4  ;;  %s35_s10 = int_to_ptr.vmem [resolvable:$true] %s34_s10 }
   0x5   :  { %s451_s11 = scalar_lea.vmem %s35_s10, 128  ;;  %p456_p1 = scmp.lt.s32.totalorder %s35_s10, %s35_s10 }
   0x6   :  { %p452_p0 = scmp.ne.s32.totalorder %s35_s10, %s451_s11  ;;  %p457_p2 = scmp.lt.s32.totalorder %s451_s11, %s451_s11 }
   0x8   :  { %p458_p3 = por %p457_p2, %p456_p1 }
   0xa   :  { %p459_p4 = pnand %p458_p3, %p452_p0 }
   0xc   :  { %462 = shalt.err (!%p459_p4)
}
   0xd   :  { %37 = dma.hbm_to_vmem [thread:$0]  %s678_s1, 128, %s35_s10, [#allocation6]  }
   0xe   :  { %s572_s14 = smov [#allocation8]   ;;  %s573_s16 = smov [#allocation2]  }
   0xf   :  { %s57_s15 = sshll.u32 %s572_s14, 4  ;;  %s24_s17 = sshll.u32 %s573_s16, 4  ;;  %s58_s15 = int_to_ptr.vmem [resolvable:$true] %s57_s15  ;;  %s25_s17 = int_to_ptr.vmem [resolvable:$true] %s24_s17 }
  0x10   :  { %s471_s18 = scalar_lea.vmem %s58_s15, 256  ;;  %p476_p6 = scmp.lt.s32.totalorder %s58_s15, %s58_s15 }
  0x11   :  { %p472_p5 = scmp.ne.s32.totalorder %s58_s15, %s471_s18  ;;  %p477_p7 = scmp.lt.s32.totalorder %s471_s18, %s471_s18 }
  0x13   :  { %p478_p8 = por %p477_p7, %p476_p6 }
  0x15   :  { %p479_p9 = pnand %p478_p8, %p472_p5 }
  0x17   :  { %482 = shalt.err (!%p479_p9)
}
  0x18   :  { %s574_s19 = smov 64   ;;  %s575_s20 = smov 4  }
  0x19   :  { %63 = dma.hbm_to_vmem [thread:$0]  %s681_s4, 256, %s58_s15, [#allocation9], %s574_s19, %s574_s19, %s575_s20  }
  0x1a   :  { %s491_s1 = scalar_lea.vmem %s25_s17, 128  ;;  %p496_p11 = scmp.lt.s32.totalorder %s25_s17, %s25_s17 }
  0x1b   :  { %p492_p10 = scmp.ne.s32.totalorder %s25_s17, %s491_s1  ;;  %p497_p12 = scmp.lt.s32.totalorder %s491_s1, %s491_s1 }
  0x1d   :  { %p498_p13 = por %p497_p12, %p496_p11 }
  0x1f   :  { %p499_p0 = pnand %p498_p13, %p492_p10 }
  0x21   :  { %502 = shalt.err (!%p499_p0)
}
  0x22   :  { %27 = dma.hbm_to_vmem [thread:$0]  %s677_s0, 128, %s25_s17, [#allocation3]  }
  0x23   :  { %s576_s25 = smov [#allocation7]   ;;  %s577_s27 = smov [#allocation10]  }
  0x24   :  { %s43_s26 = sshll.u32 %s576_s25, 4  ;;  %s71_s28 = sshll.u32 %s577_s27, 4  ;;  %s44_s26 = int_to_ptr.vmem [resolvable:$true] %s43_s26  ;;  %s72_s28 = int_to_ptr.vmem [resolvable:$true] %s71_s28 }
  0x25   :  { %s511_s29 = scalar_lea.vmem %s44_s26, 256  ;;  %p516_p2 = scmp.lt.s32.totalorder %s44_s26, %s44_s26 }
  0x26   :  { %p512_p1 = scmp.ne.s32.totalorder %s44_s26, %s511_s29  ;;  %p517_p3 = scmp.lt.s32.totalorder %s511_s29, %s511_s29 }
  0x28   :  { %p518_p4 = por %p517_p3, %p516_p2 }
  0x2a   :  { %p519_p5 = pnand %p518_p4, %p512_p1 }
  0x2c   :  { %522 = shalt.err (!%p519_p5)
}
  0x2d   :  { %49 = dma.hbm_to_vmem [thread:$0]  %s679_s2, 256, %s44_s26, [#allocation6], %s574_s19, %s574_s19, %s575_s20  }
  0x2e   :  { %s531_s0 = scalar_lea.vmem %s72_s28, 256  ;;  %p536_p7 = scmp.lt.s32.totalorder %s72_s28, %s72_s28 }
  0x2f   :  { %p532_p6 = scmp.ne.s32.totalorder %s72_s28, %s531_s0  ;;  %p537_p8 = scmp.lt.s32.totalorder %s531_s0, %s531_s0 }
  0x31   :  { %p538_p9 = por %p537_p8, %p536_p7 }
  0x33   :  { %p539_p10 = pnand %p538_p9, %p532_p6 }
  0x35   :  { %542 = shalt.err (!%p539_p10)
}
  0x36   :  { %77 = dma.hbm_to_vmem [thread:$0]  %s683_s6, 256, %s72_s28, [#allocation9], %s574_s19, %s574_s19, %s575_s20  }
  0x37   :  { %563 = dma.done.wait [#allocation3], 128  }
  0x38   :  { %564 = vsyncadd [#allocation3], 4294967168 }
  0x39   :  { %565 = dma.done.wait [#allocation6], 384  }
  0x3a   :  { %566 = vsyncadd [#allocation6], 4294966912 }
  0x3b   :  { %567 = dma.done.wait [#allocation9], 512  }
  0x3c   :  { %568 = vsyncadd [#allocation9], 4294966784  ;;  %v578_v0 = vmov 0.0   ;;  %vm579_vm0 = vmmov 0   ;;  %v437_v1 = vld [vmem:[#allocation7 + $0x8] sm:$0xff]   ;;  %v438_v2 = vld [vmem:[#allocation7] sm:$0xff]  }
  0x3d   :  { %397 = vmatprep.subr.bf16.mxu0 %v578_v0  ;;  %401 = vmatprep.mubr.msk.bf16.mxu0 %vm579_vm0, %v578_v0  ;;  %v98_v3 = vld [vmem:[#allocation2] sm:$0xff]  ;;  %vm123_vm1 = vcmask 261120   ;;  %v439_v5 = vld [vmem:[#allocation8 + $0x8] sm:$0xff]   ;;  %vm248_vm2 = vcmask 1043456   ;;  %v441_v15 = vld [vmem:[#allocation10 + $0x8] sm:$0xff]   ;;  %vm244_vm3 = vcmask 64512  }
  0x3e   :  { %405 = vmatprep.subr.bf16.mxu1 %v578_v0  ;;  %409 = vmatprep.mubr.msk.bf16.mxu1 %vm579_vm0, %v578_v0  ;;  %v99_v4 = vpack.c.bf16 %v98_v3, %v98_v3  ;;  %v440_v6 = vld [vmem:[#allocation8] sm:$0xff]   ;;  %v241_v18 = vld [vmem:[#allocation5] sm:$0xff]  ;;  %v442_v20 = vld [vmem:[#allocation10] sm:$0xff]   ;;  %s580_s16 = smov [#allocation11]  }
  0x3f   :  { %398 = vmatpush3.bf16.msra.mxu0 %v437_v1  ;;  %406 = vmatpush3.bf16.msra.mxu1 %v439_v5  ;;  %v243_v7 = vld [vmem:[%s684_s7] sm:$0xf]  ;;  %v242_v19 = vpack.c.bf16 %v241_v18, %v241_v18 }
  0x40   :  { %399 = vmatprep.subr.bf16.mxu0 %v578_v0  ;;  %407 = vmatprep.subr.bf16.mxu1 %v578_v0  ;;  %v250_v8 = vsel %vm248_vm2, %v243_v7, 0  ;;  %v373_v9 = vld [vmem:[%s680_s3] ss:$0 sm:$0xff] }
  0x41   :  { %v377_v21 = vld [vmem:[%s682_s5] ss:$0 sm:$0xff]  ;;  %s362_s5 = sshll.u32 %s580_s16, 4  ;;  %s363_s5 = int_to_ptr.vmem [resolvable:$true] %s362_s5 }
  0x42   :  { %v385_v34 = vld [vmem:[%s685_s8] ss:$0 sm:$0xff]  ;;  %s543_s17 = scalar_lea.vmem %s363_s5, 128  ;;  %p548_p12 = scmp.lt.s32.totalorder %s363_s5, %s363_s5 }
  0x43   :  { %400 = vmatpush3.bf16.msra.mxu0 %v438_v2  ;;  %408 = vmatpush3.bf16.msra.mxu1 %v440_v6  ;;  %p544_p11 = scmp.ne.s32.totalorder %s363_s5, %s543_s17  ;;  %p549_p13 = scmp.lt.s32.totalorder %s543_s17, %s543_s17 }
  0x44   :  { %413 = vmatprep.subr.bf16.mxu0 %v578_v0  ;;  %419 = vmatprep.subr.bf16.mxu1 %v578_v0 }
  0x45   :  { %p550_p0 = por %p549_p13, %p548_p12 }
  0x46   :  { %402 = vmatmul.mubr.msk.bf16.vlgmr.msra.gmra.mxu0 %vm123_vm1, %v99_v4 }
  0x47   :  { %415 = vmatprep.mubr.msk.bf16.mxu0 %vm579_vm0, %v578_v0  ;;  %414 = vmatpush3.bf16.msra.mxu0 %v250_v8  ;;  %p551_p1 = pnand %p550_p0, %p544_p11 }
  0x4e   :  { %416 = vmatmul.mubr.msk.bf16.vlgmr.msra.gmra.mxu0 %vm244_vm3, %v242_v19 }
 0x106   :  { %v161_v10 = vpop.f32.mrf.mxu0 }
 0x107   :  { %v162_v11 = vadd.f32 %v373_v9, %v161_v10 }
 0x108   :  { %v403_v12 = vpop.f32.mrf.mxu0 }
 0x109   :  { %v167_v13 = vmax.f32 %v162_v11, 0.0 }
 0x10a   :  { %v164_v14 = vpop.f32.mrf.mxu0 }
 0x10b   :  { %v168_v16 = vpack.c.bf16 %v167_v13, %v167_v13 }
 0x10c   :  { %v404_v17 = vpop.f32.mrf.mxu0 }
 0x10d   :  { %410 = vmatmul.mubr.msk.bf16.vlgmr.msra.gmra.mxu1 %vm123_vm1, %v168_v16 }
 0x10e   :  { %420 = vmatpush3.bf16.msra.mxu1 %v441_v15  ;;  %423 = vmatprep.mubr.msk.bf16.mxu1 %vm579_vm0, %v578_v0  ;;  %v286_v29 = vpop.f32.mrf.mxu0 }
 0x10f   :  { %421 = vmatprep.subr.bf16.mxu1 %v578_v0 }
 0x110   :  { %v417_v30 = vpop.f32.mrf.mxu0 }
 0x112   :  { %422 = vmatpush3.bf16.msra.mxu1 %v442_v20  ;;  %v289_v31 = vpop.f32.mrf.mxu0 }
 0x114   :  { %v418_v32 = vpop.f32.mrf.mxu0 }
 0x1cd   :  { %v229_v22 = vpop.f32.mrf.mxu1 }
 0x1ce   :  { %v230_v23 = vadd.f32 %v377_v21, %v229_v22 }
 0x1cf   :  { %v411_v24 = vpop.f32.mrf.mxu1 }
 0x1d0   :  { %v235_v25 = vadd.f32 %v230_v23, %v98_v3 }
 0x1d1   :  { %v232_v26 = vpop.f32.mrf.mxu1 }
 0x1d2   :  { %v236_v27 = vpack.c.bf16 %v235_v25, %v235_v25 }
 0x1d3   :  { %v412_v28 = vpop.f32.mrf.mxu1 }
 0x1d4   :  { %424 = vmatmul.mubr.msk.bf16.vlgmr.msra.gmra.mxu1 %vm123_vm1, %v236_v27 }
 0x294   :  { %v341_v33 = vpop.f32.mrf.mxu1 }
 0x295   :  { %v342_v35 = vadd.f32 %v341_v33, %v286_v29 }
 0x296   :  { %v425_v36 = vpop.f32.mrf.mxu1 }
 0x297   :  { %v354_v37 = vadd.f32 %v385_v34, %v342_v35 }
 0x298   :  { %v344_v38 = vpop.f32.mrf.mxu1 }
 0x299   :  { %355 = vst [vmem:[#allocation11] sm:$0xff] %v354_v37 }
 0x29a   :  { %v426_v39 = vpop.f32.mrf.mxu1 }
 0x29b   :  { %554 = shalt.err (!%p551_p1)
}
 0x29c   :  { %365 = dma.vmem_to_hbm [thread:$0]  %s363_s5, 128, %s686_s9, [#allocation4]  }
 0x29d   :  { %569 = dma.done.wait [#allocation4], 128  }
 0x29e   :  { %570 = vsyncadd [#allocation4], 4294967168 }
 0x29f   :  { %369 = vsyncpa [#allocation3], 1 }
 0x2a0   :  { %370 = vsyncpa [#allocation6], 1 }
 0x2a1   :  { %371 = vsyncpa [#allocation9], 1 }
 0x2a2   :  { %372 = vsyncpa [#allocation4], 1 }

// kernel: tpu_custom_call.1
= control target key start
LH: loop header
LB: loop body
LE: loop exit
PB: predicated region body
PF: predicated region fallthrough
CT: control target
= control target key end

     0   :  { %14 = vsyncpa [#allocation3], 0  ;;  %s677_s0 = inlined_call_operand.hbm [shape: f32[8,32], index: 0, kind: input, shape index: {}]   ;;  %s678_s1 = inlined_call_operand.hbm [shape: f32[8,8], index: 1, kind: input, shape index: {}]   ;;  %s679_s2 = inlined_call_operand.hbm [shape: bf16[32,32], index: 2, kind: input, shape index: {}]   ;;  %s680_s3 = inlined_call_operand.vmem [shape: f32[1,32], index: 3, kind: input, shape index: {}]   ;;  %s681_s4 = inlined_call_operand.hbm [shape: bf16[32,32], index: 4, kind: input, shape index: {}]   ;;  %s682_s5 = inlined_call_operand.vmem [shape: f32[1,32], index: 5, kind: input, shape index: {}]   ;;  %s683_s6 = inlined_call_operand.hbm [shape: bf16[32,128], index: 6, kind: input, shape index: {}]   ;;  %s684_s7 = inlined_call_operand.vmem [shape: bf16[8,128], index: 7, kind: input, shape index: {}]   ;;  %s685_s8 = inlined_call_operand.vmem [shape: f32[1,128], index: 8, kind: input, shape index: {}]   ;;  %s686_s9 = inlined_call_operand.hbm [shape: f32[8,128], index: 9, kind: output, shape index: {}]  }
   0x1   :  { %15 = vsyncpa [#allocation6], 0 }
   0x2   :  { %16 = vsyncpa [#allocation9], 0 }
   0x3   :  { %17 = vsyncpa [#allocation4], 0  ;;  %s571_s30 = smov [#allocation5]  }
   0x4   :  { %s34_s10 = sshll.u32 %s571_s30, 4  ;;  %s35_s10 = int_to_ptr.vmem [resolvable:$true] %s34_s10 }
   0x5   :  { %s451_s11 = scalar_lea.vmem %s35_s10, 128  ;;  %p456_p1 = scmp.lt.s32.totalorder %s35_s10, %s35_s10 }
   0x6   :  { %p452_p0 = scmp.ne.s32.totalorder %s35_s10, %s451_s11  ;;  %p457_p2 = scmp.lt.s32.totalorder %s451_s11, %s451_s11 }
   0x8   :  { %p458_p3 = por %p457_p2, %p456_p1 }
   0xa   :  { %p459_p4 = pnand %p458_p3, %p452_p0 }
   0xc   :  { %462 = shalt.err (!%p459_p4)
}
   0xd   :  { %37 = dma.hbm_to_vmem [thread:$0]  %s678_s1, 128, %s35_s10, [#allocation6]  }
   0xe   :  { %s572_s14 = smov [#allocation8]   ;;  %s573_s16 = smov [#allocation2]  }
   0xf   :  { %s57_s15 = sshll.u32 %s572_s14, 4  ;;  %s24_s17 = sshll.u32 %s573_s16, 4  ;;  %s58_s15 = int_to_ptr.vmem [resolvable:$true] %s57_s15  ;;  %s25_s17 = int_to_ptr.vmem [resolvable:$true] %s24_s17 }
  0x10   :  { %s471_s18 = scalar_lea.vmem %s58_s15, 256  ;;  %p476_p6 = scmp.lt.s32.totalorder %s58_s15, %s58_s15 }
  0x11   :  { %p472_p5 = scmp.ne.s32.totalorder %s58_s15, %s471_s18  ;;  %p477_p7 = scmp.lt.s32.totalorder %s471_s18, %s471_s18 }
  0x13   :  { %p478_p8 = por %p477_p7, %p476_p6 }
  0x15   :  { %p479_p9 = pnand %p478_p8, %p472_p5 }
  0x17   :  { %482 = shalt.err (!%p479_p9)
}
  0x18   :  { %s574_s19 = smov 64   ;;  %s575_s20 = smov 4  }
  0x19   :  { %63 = dma.hbm_to_vmem [thread:$0]  %s681_s4, 256, %s58_s15, [#allocation9], %s574_s19, %s574_s19, %s575_s20  }
  0x1a   :  { %s491_s1 = scalar_lea.vmem %s25_s17, 128  ;;  %p496_p11 = scmp.lt.s32.totalorder %s25_s17, %s25_s17 }
  0x1b   :  { %p492_p10 = scmp.ne.s32.totalorder %s25_s17, %s491_s1  ;;  %p497_p12 = scmp.lt.s32.totalorder %s491_s1, %s491_s1 }
  0x1d   :  { %p498_p13 = por %p497_p12, %p496_p11 }
  0x1f   :  { %p499_p0 = pnand %p498_p13, %p492_p10 }
  0x21   :  { %502 = shalt.err (!%p499_p0)
}
  0x22   :  { %27 = dma.hbm_to_vmem [thread:$0]  %s677_s0, 128, %s25_s17, [#allocation3]  }
  0x23   :  { %s576_s25 = smov [#allocation7]   ;;  %s577_s27 = smov [#allocation10]  }
  0x24   :  { %s43_s26 = sshll.u32 %s576_s25, 4  ;;  %s71_s28 = sshll.u32 %s577_s27, 4  ;;  %s44_s26 = int_to_ptr.vmem [resolvable:$true] %s43_s26  ;;  %s72_s28 = int_to_ptr.vmem [resolvable:$true] %s71_s28 }
  0x25   :  { %s511_s29 = scalar_lea.vmem %s44_s26, 256  ;;  %p516_p2 = scmp.lt.s32.totalorder %s44_s26, %s44_s26 }
  0x26   :  { %p512_p1 = scmp.ne.s32.totalorder %s44_s26, %s511_s29  ;;  %p517_p3 = scmp.lt.s32.totalorder %s511_s29, %s511_s29 }
  0x28   :  { %p518_p4 = por %p517_p3, %p516_p2 }
  0x2a   :  { %p519_p5 = pnand %p518_p4, %p512_p1 }
  0x2c   :  { %522 = shalt.err (!%p519_p5)
}
  0x2d   :  { %49 = dma.hbm_to_vmem [thread:$0]  %s679_s2, 256, %s44_s26, [#allocation6], %s574_s19, %s574_s19, %s575_s20  }
  0x2e   :  { %s531_s0 = scalar_lea.vmem %s72_s28, 256  ;;  %p536_p7 = scmp.lt.s32.totalorder %s72_s28, %s72_s28 }
  0x2f   :  { %p532_p6 = scmp.ne.s32.totalorder %s72_s28, %s531_s0  ;;  %p537_p8 = scmp.lt.s32.totalorder %s531_s0, %s531_s0 }
  0x31   :  { %p538_p9 = por %p537_p8, %p536_p7 }
  0x33   :  { %p539_p10 = pnand %p538_p9, %p532_p6 }
  0x35   :  { %542 = shalt.err (!%p539_p10)
}
  0x36   :  { %77 = dma.hbm_to_vmem [thread:$0]  %s683_s6, 256, %s72_s28, [#allocation9], %s574_s19, %s574_s19, %s575_s20  }
  0x37   :  { %563 = dma.done.wait [#allocation3], 128  }
  0x38   :  { %564 = vsyncadd [#allocation3], 4294967168 }
  0x39   :  { %565 = dma.done.wait [#allocation6], 384  }
  0x3a   :  { %566 = vsyncadd [#allocation6], 4294966912 }
  0x3b   :  { %567 = dma.done.wait [#allocation9], 512  }
  0x3c   :  { %568 = vsyncadd [#allocation9], 4294966784  ;;  %v578_v0 = vmov 0.0   ;;  %vm579_vm0 = vmmov 0   ;;  %v437_v1 = vld [vmem:[#allocation7 + $0x8] sm:$0xff]   ;;  %v438_v2 = vld [vmem:[#allocation7] sm:$0xff]  }
  0x3d   :  { %397 = vmatprep.subr.bf16.mxu0 %v578_v0  ;;  %401 = vmatprep.mubr.msk.bf16.mxu0 %vm579_vm0, %v578_v0  ;;  %v98_v3 = vld [vmem:[#allocation2] sm:$0xff]  ;;  %vm123_vm1 = vcmask 261120   ;;  %v439_v5 = vld [vmem:[#allocation8 + $0x8] sm:$0xff]   ;;  %vm248_vm2 = vcmask 1043456   ;;  %v441_v15 = vld [vmem:[#allocation10 + $0x8] sm:$0xff]   ;;  %vm244_vm3 = vcmask 64512  }
  0x3e   :  { %405 = vmatprep.subr.bf16.mxu1 %v578_v0  ;;  %409 = vmatprep.mubr.msk.bf16.mxu1 %vm579_vm0, %v578_v0  ;;  %v99_v4 = vpack.c.bf16 %v98_v3, %v98_v3  ;;  %v440_v6 = vld [vmem:[#allocation8] sm:$0xff]   ;;  %v241_v18 = vld [vmem:[#allocation5] sm:$0xff]  ;;  %v442_v20 = vld [vmem:[#allocation10] sm:$0xff]   ;;  %s580_s16 = smov [#allocation11]  }
  0x3f   :  { %398 = vmatpush3.bf16.msra.mxu0 %v437_v1  ;;  %406 = vmatpush3.bf16.msra.mxu1 %v439_v5  ;;  %v243_v7 = vld [vmem:[%s684_s7] sm:$0xf]  ;;  %v242_v19 = vpack.c.bf16 %v241_v18, %v241_v18 }
  0x40   :  { %399 = vmatprep.subr.bf16.mxu0 %v578_v0  ;;  %407 = vmatprep.subr.bf16.mxu1 %v578_v0  ;;  %v250_v8 = vsel %vm248_vm2, %v243_v7, 0  ;;  %v373_v9 = vld [vmem:[%s680_s3] ss:$0 sm:$0xff] }
  0x41   :  { %v377_v21 = vld [vmem:[%s682_s5] ss:$0 sm:$0xff]  ;;  %s362_s5 = sshll.u32 %s580_s16, 4  ;;  %s363_s5 = int_to_ptr.vmem [resolvable:$true] %s362_s5 }
  0x42   :  { %v385_v34 = vld [vmem:[%s685_s8] ss:$0 sm:$0xff]  ;;  %s543_s17 = scalar_lea.vmem %s363_s5, 128  ;;  %p548_p12 = scmp.lt.s32.totalorder %s363_s5, %s363_s5 }
  0x43   :  { %400 = vmatpush3.bf16.msra.mxu0 %v438_v2  ;;  %408 = vmatpush3.bf16.msra.mxu1 %v440_v6  ;;  %p544_p11 = scmp.ne.s32.totalorder %s363_s5, %s543_s17  ;;  %p549_p13 = scmp.lt.s32.totalorder %s543_s17, %s543_s17 }
  0x44   :  { %413 = vmatprep.subr.bf16.mxu0 %v578_v0  ;;  %419 = vmatprep.subr.bf16.mxu1 %v578_v0 }
  0x45   :  { %p550_p0 = por %p549_p13, %p548_p12 }
  0x46   :  { %402 = vmatmul.mubr.msk.bf16.vlgmr.msra.gmra.mxu0 %vm123_vm1, %v99_v4 }
  0x47   :  { %415 = vmatprep.mubr.msk.bf16.mxu0 %vm579_vm0, %v578_v0  ;;  %414 = vmatpush3.bf16.msra.mxu0 %v250_v8  ;;  %p551_p1 = pnand %p550_p0, %p544_p11 }
  0x4e   :  { %416 = vmatmul.mubr.msk.bf16.vlgmr.msra.gmra.mxu0 %vm244_vm3, %v242_v19 }
 0x106   :  { %v161_v10 = vpop.f32.mrf.mxu0 }
 0x107   :  { %v162_v11 = vadd.f32 %v373_v9, %v161_v10 }
 0x108   :  { %v403_v12 = vpop.f32.mrf.mxu0 }
 0x109   :  { %v167_v13 = vmax.f32 %v162_v11, 0.0 }
 0x10a   :  { %v164_v14 = vpop.f32.mrf.mxu0 }
 0x10b   :  { %v168_v16 = vpack.c.bf16 %v167_v13, %v167_v13 }
 0x10c   :  { %v404_v17 = vpop.f32.mrf.mxu0 }
 0x10d   :  { %410 = vmatmul.mubr.msk.bf16.vlgmr.msra.gmra.mxu1 %vm123_vm1, %v168_v16 }
 0x10e   :  { %420 = vmatpush3.bf16.msra.mxu1 %v441_v15  ;;  %423 = vmatprep.mubr.msk.bf16.mxu1 %vm579_vm0, %v578_v0  ;;  %v286_v29 = vpop.f32.mrf.mxu0 }
 0x10f   :  { %421 = vmatprep.subr.bf16.mxu1 %v578_v0 }
 0x110   :  { %v417_v30 = vpop.f32.mrf.mxu0 }
 0x112   :  { %422 = vmatpush3.bf16.msra.mxu1 %v442_v20  ;;  %v289_v31 = vpop.f32.mrf.mxu0 }
 0x114   :  { %v418_v32 = vpop.f32.mrf.mxu0 }
 0x1cd   :  { %v229_v22 = vpop.f32.mrf.mxu1 }
 0x1ce   :  { %v230_v23 = vadd.f32 %v377_v21, %v229_v22 }
 0x1cf   :  { %v411_v24 = vpop.f32.mrf.mxu1 }
 0x1d0   :  { %v235_v25 = vadd.f32 %v230_v23, %v98_v3 }
 0x1d1   :  { %v232_v26 = vpop.f32.mrf.mxu1 }
 0x1d2   :  { %v236_v27 = vpack.c.bf16 %v235_v25, %v235_v25 }
 0x1d3   :  { %v412_v28 = vpop.f32.mrf.mxu1 }
 0x1d4   :  { %424 = vmatmul.mubr.msk.bf16.vlgmr.msra.gmra.mxu1 %vm123_vm1, %v236_v27 }
 0x294   :  { %v341_v33 = vpop.f32.mrf.mxu1 }
 0x295   :  { %v342_v35 = vadd.f32 %v341_v33, %v286_v29 }
 0x296   :  { %v425_v36 = vpop.f32.mrf.mxu1 }
 0x297   :  { %v354_v37 = vadd.f32 %v385_v34, %v342_v35 }
 0x298   :  { %v344_v38 = vpop.f32.mrf.mxu1 }
 0x299   :  { %355 = vst [vmem:[#allocation11] sm:$0xff] %v354_v37 }
 0x29a   :  { %v426_v39 = vpop.f32.mrf.mxu1 }
 0x29b   :  { %554 = shalt.err (!%p551_p1)
}
 0x29c   :  { %365 = dma.vmem_to_hbm [thread:$0]  %s363_s5, 128, %s686_s9, [#allocation4]  }
 0x29d   :  { %569 = dma.done.wait [#allocation4], 128  }
 0x29e   :  { %570 = vsyncadd [#allocation4], 4294967168 }
 0x29f   :  { %369 = vsyncpa [#allocation3], 1 }
 0x2a0   :  { %370 = vsyncpa [#allocation6], 1 }
 0x2a1   :  { %371 = vsyncpa [#allocation9], 1 }
 0x2a2   :  { %372 = vsyncpa [#allocation4], 1 }

</bundles_post_ra>
